<compile_context>
chip_gen: v5e
topology: v5e:2x2
jax: 0.10.0
libtpu: 0.0.40
codegen_flags: <defaults>
</compile_context>

<pallas_src>
import jax
import jax.numpy as jnp
from jax import lax
from jax.experimental import pallas as pl
from jax.experimental.pallas import tpu as pltpu

NEG_SLOPE = 0.01  # torch.nn.LeakyReLU default negative_slope


def _round_up(n, m):
    return ((n + m - 1) // m) * m


# ----------------------------- Pallas kernel ------------------------------- #
def _mlp_head_kernel(x_ref, w1_ref, b1_ref, w2_ref, b2_ref, wr_ref, br_ref,
                     o_ref):
    # MLP layer 0: Linear(-1, hidden) + LeakyReLU  (bf16 MXU, f32 accumulate)
    h = jnp.dot(x_ref[...], w1_ref[...],
                preferred_element_type=jnp.float32) + b1_ref[...]
    h = jnp.maximum(h, NEG_SLOPE * h)
    # MLP layer 1: Linear(hidden, hidden) + LeakyReLU
    h = jnp.dot(h.astype(jnp.bfloat16), w2_ref[...],
                preferred_element_type=jnp.float32) + b2_ref[...]
    h = jnp.maximum(h, NEG_SLOPE * h)
    # Readout Linear(hidden, 1), computed as [1,H] x [tm,H] contracting on H
    # (transposed RHS handled by the MXU -- no explicit h.T materialization),
    # producing a lane-dense [1, tm] row (unmasked output store).
    logits = lax.dot_general(
        wr_ref[...], h.astype(jnp.bfloat16),
        dimension_numbers=(((1,), (1,)), ((), ())),
        preferred_element_type=jnp.float32) + br_ref[0]
    o_ref[...] = logits[None].astype(o_ref.dtype)            # (1, 1, tm)


def mlp_head(x, w1, b1, w2, b2, wr, br, *, tm_max=512):
    """x: [M, F_in] float32. Returns [M, 1] float32 (= readout output)."""
    M, F_in = x.shape
    H = w1.shape[1]

    # Pad rows only to the lane-store granule (128), not to a multiple of the
    # tile, so at most 127 dead rows regardless of M.
    M_pad = _round_up(M, 128)
    # Keep >= 2 grid steps when possible so the 'parallel' axis can shard
    # across both v7x TensorCores (harmless on 1-TC v5e/v6e).
    cap = tm_max if M_pad < 256 else min(tm_max, M_pad // 2)
    tm = 128
    for cand in range(128, cap + 1, 128):
        if M_pad % cand == 0:
            tm = cand
    num_tiles = M_pad // tm
    if M_pad != M:
        x = jnp.pad(x, ((0, M_pad - M), (0, 0)))

    # bf16 operands for the MXU; f32 biases / SMEM scalar readout bias.
    x = x.astype(jnp.bfloat16)
    w1 = w1.astype(jnp.bfloat16)
    w2 = w2.astype(jnp.bfloat16)
    wr_row = wr.reshape(1, H).astype(jnp.bfloat16)           # readout W as row
    b1 = b1.reshape(1, H).astype(jnp.float32)
    b2 = b2.reshape(1, H).astype(jnp.float32)
    br = br.reshape(1).astype(jnp.float32)                   # scalar -> SMEM

    out = pl.pallas_call(
        _mlp_head_kernel,
        out_shape=jax.ShapeDtypeStruct((num_tiles, 1, tm), jnp.float32),
        grid_spec=pltpu.PrefetchScalarGridSpec(
            num_scalar_prefetch=0,
            grid=(num_tiles,),
            in_specs=[
                pl.BlockSpec((tm, F_in), lambda i: (i, 0)),   # x tile
                pl.BlockSpec((F_in, H), lambda i: (0, 0)),    # W1 (resident)
                pl.BlockSpec((1, H), lambda i: (0, 0)),       # b1
                pl.BlockSpec((H, H), lambda i: (0, 0)),       # W2
                pl.BlockSpec((1, H), lambda i: (0, 0)),       # b2
                pl.BlockSpec((1, H), lambda i: (0, 0)),       # W_readout row
                pl.BlockSpec(memory_space=pltpu.MemorySpace.SMEM),  # b_readout
            ],
            out_specs=pl.BlockSpec((1, 1, tm), lambda i: (i, 0, 0)),
        ),
        compiler_params=pltpu.CompilerParams(
            dimension_semantics=("parallel",)),
    )(x, w1, b1, w2, b2, wr_row, br)

    # (num_tiles, 1, tm) lane-dense slab -> [M, 1].  Matches the reference:
    # x.squeeze() on an [M, hidden] tensor (M>1, hidden>1) is a no-op, so the
    # readout output there is also [M, 1].
    return out.reshape(M_pad)[:M].reshape(M, 1)


# ------------------------------ JAX glue ----------------------------------- #
def toy_hetero_gnn(x_dict, edge_index_dict, gnn_params):
    """Stand-in for the injected `gnn` submodule (architecture unspecified in
    the reference code): mean-aggregates 'host' neighbor features into 'con'
    nodes plus a self transform.  Returns a dict with updated 'con' features.
    """
    # TODO(synk): the real `gnn` submodule is passed in externally in PyTorch;
    # its architecture is not defined in binary_NIDS_model, so a simple hetero
    # mean-aggregation layer (scatter-add in XLA) is used here.
    x_con = x_dict["con"]
    x_host = x_dict["host"]
    src, dst = edge_index_dict[("host", "to", "con")]
    n_con = x_con.shape[0]

    msg = x_host[src] @ gnn_params["w_nbr"]                  # [E, F_gnn]
    agg = jnp.zeros((n_con, msg.shape[1]), jnp.float32).at[dst].add(msg)
    deg = jnp.zeros((n_con,), jnp.float32).at[dst].add(1.0)
    deg = jnp.maximum(deg, 1.0)[:, None]
    out_con = x_con @ gnn_params["w_self"] + agg / deg       # [N_con, F_gnn]
    return {"con": out_con, "host": x_host}


def binary_nids_forward(x_dict, edge_index_dict, current_timestep_flow_indices,
                        gnn_params, mlp_params, temporal=True):
    x = toy_hetero_gnn(x_dict, edge_index_dict, gnn_params)
    if temporal:
        # TODO(synk): for very large M this gather could be fused into the
        # kernel via PrefetchScalarGridSpec(num_scalar_prefetch=1) + Element
        # row indexing; kept in XLA for these toy sizes.
        x = x["con"][current_timestep_flow_indices]          # gather (glue)
    else:
        x = x["con"]
    return mlp_head(x,
                    mlp_params["w1"], mlp_params["b1"],
                    mlp_params["w2"], mlp_params["b2"],
                    mlp_params["wr"], mlp_params["br"])


def _mlp_head_ref(x, w1, b1, w2, b2, wr, br):
    """Pure-JAX f32 reference for the MLP head (correctness check)."""
    h = x @ w1 + b1
    h = jnp.where(h > 0, h, NEG_SLOPE * h)
    h = h @ w2 + b2
    h = jnp.where(h > 0, h, NEG_SLOPE * h)
    return h @ wr + br


# ------------------------------- demo run ----------------------------------- #
if __name__ == "__main__":
    key = jax.random.PRNGKey(0)
    ks = jax.random.split(key, 12)

    # Small shapes: 64 'con' (flow) nodes w/ 16 features, 48 'host' nodes w/ 8
    # features, 128 host->con edges, hidden=128 (module default), 32 flows.
    N_CON, F_CON = 64, 16
    N_HOST, F_HOST = 48, 8
    E = 128
    F_GNN = 16
    HIDDEN = 128
    M = 32

    x_dict = {
        "con": jax.random.normal(ks[0], (N_CON, F_CON), jnp.float32),
        "host": jax.random.normal(ks[1], (N_HOST, F_HOST), jnp.float32),
    }
    edge_index_dict = {
        ("host", "to", "con"): (
            jax.random.randint(ks[2], (E,), 0, N_HOST),
            jax.random.randint(ks[3], (E,), 0, N_CON),
        )
    }
    current_timestep_flow_indices = jax.random.permutation(ks[4], N_CON)[:M]

    gnn_params = {
        "w_self": jax.random.normal(ks[5], (F_CON, F_GNN), jnp.float32) * 0.1,
        "w_nbr": jax.random.normal(ks[6], (F_HOST, F_GNN), jnp.float32) * 0.1,
    }
    # MLP head params (Linear(-1, H) lazily resolves in_features = F_GNN).
    mlp_params = {
        "w1": jax.random.normal(ks[7], (F_GNN, HIDDEN), jnp.float32) * 0.1,
        "b1": jax.random.normal(ks[8], (HIDDEN,), jnp.float32) * 0.01,
        "w2": jax.random.normal(ks[9], (HIDDEN, HIDDEN), jnp.float32) * 0.1,
        "b2": jax.random.normal(ks[10], (HIDDEN,), jnp.float32) * 0.01,
        "wr": jax.random.normal(ks[11], (HIDDEN, 1), jnp.float32) * 0.1,
        "br": jnp.zeros((1,), jnp.float32),
    }

    out = binary_nids_forward(x_dict, edge_index_dict,
                              current_timestep_flow_indices,
                              gnn_params, mlp_params, temporal=True)
    out = jax.block_until_ready(out)
    assert out.shape == (M, 1), out.shape
    assert jnp.all(jnp.isfinite(out))

    # Correctness check vs. a pure-f32 JAX reference (bf16 MXU inputs ->
    # small deviation expected; f32 accumulation keeps it tight).
    x_gnn = toy_hetero_gnn(x_dict, edge_index_dict, gnn_params)["con"]
    x_sel = x_gnn[current_timestep_flow_indices]
    ref = _mlp_head_ref(x_sel, mlp_params["w1"], mlp_params["b1"],
                        mlp_params["w2"], mlp_params["b2"],
                        mlp_params["wr"], mlp_params["br"])
    assert jnp.allclose(out, ref, atol=2e-2, rtol=2e-2), (
        float(jnp.max(jnp.abs(out - ref))))

    print("KERNEL_OK")
</pallas_src>

<mosaic_0001>
module attributes {stable_mosaic.version = 11 : i64} {
  func.func @_mlp_head_kernel(%arg0: i32, %arg1: memref<128x16xbf16, #tpu.memory_space<vmem>>, %arg2: memref<16x128xbf16, #tpu.memory_space<vmem>>, %arg3: memref<1x128xf32, #tpu.memory_space<vmem>>, %arg4: memref<128x128xbf16, #tpu.memory_space<vmem>>, %arg5: memref<1x128xf32, #tpu.memory_space<vmem>>, %arg6: memref<1x128xbf16, #tpu.memory_space<vmem>>, %arg7: memref<1xf32, #tpu.memory_space<smem>>, %arg8: memref<1x1x128xf32, #tpu.memory_space<vmem>>) attributes {dimension_semantics = [#tpu.dimension_semantics<parallel>], iteration_bounds = array<i64: 1>, scalar_prefetch = 0 : i64, scratch_operands = 0 : i64, tpu.core_type = #tpu.core_type<tc>, window_params = [{transform_indices = @transform_0, window_bounds = array<i64: 128, 16>}, {pipeline_mode = #tpu.pipeline_mode<synchronous>, transform_indices = @transform_1, window_bounds = array<i64: 16, 128>}, {pipeline_mode = #tpu.pipeline_mode<synchronous>, transform_indices = @transform_2, window_bounds = array<i64: 1, 128>}, {pipeline_mode = #tpu.pipeline_mode<synchronous>, transform_indices = @transform_3, window_bounds = array<i64: 128, 128>}, {pipeline_mode = #tpu.pipeline_mode<synchronous>, transform_indices = @transform_4, window_bounds = array<i64: 1, 128>}, {pipeline_mode = #tpu.pipeline_mode<synchronous>, transform_indices = @transform_5, window_bounds = array<i64: 1, 128>}, {transform_indices = @transform_6, window_bounds = array<i64: 1>}, {transform_indices = @transform_7, window_bounds = array<i64: 1, 1, 128>}]} {
    %c0 = arith.constant 0 : index
    %c0_0 = arith.constant 0 : index
    %0 = vector.load %arg1[%c0, %c0_0] : memref<128x16xbf16, #tpu.memory_space<vmem>>, vector<128x16xbf16>
    %c0_1 = arith.constant 0 : index
    %c0_2 = arith.constant 0 : index
    %1 = vector.load %arg2[%c0_1, %c0_2] : memref<16x128xbf16, #tpu.memory_space<vmem>>, vector<16x128xbf16>
    %cst = arith.constant dense<0.000000e+00> : vector<128x128xf32>
    %2 = tpu.matmul %0, %1, %cst {dimension_numbers = #tpu.dot_dimension_numbers<[1], [0], [0], [1], [0, 0, 1, 1], [], []>} : vector<128x16xbf16>, vector<16x128xbf16>, vector<128x128xf32> -> vector<128x128xf32>
    %c0_3 = arith.constant 0 : index
    %c0_4 = arith.constant 0 : index
    %3 = vector.load %arg3[%c0_3, %c0_4] : memref<1x128xf32, #tpu.memory_space<vmem>>, vector<1x128xf32>
    %4 = vector.broadcast %3 : vector<1x128xf32> to vector<128x128xf32>
    %5 = arith.addf %2, %4 : vector<128x128xf32>
    %cst_5 = arith.constant 0.00999999977 : f32
    %6 = vector.broadcast %cst_5 : f32 to vector<128x128xf32>
    %7 = arith.mulf %6, %5 : vector<128x128xf32>
    %8 = arith.maximumf %5, %7 : vector<128x128xf32>
    %9 = arith.truncf %8 : vector<128x128xf32> to vector<128x128xbf16>
    %c0_6 = arith.constant 0 : index
    %c0_7 = arith.constant 0 : index
    %10 = vector.load %arg4[%c0_6, %c0_7] : memref<128x128xbf16, #tpu.memory_space<vmem>>, vector<128x128xbf16>
    %cst_8 = arith.constant dense<0.000000e+00> : vector<128x128xf32>
    %11 = tpu.matmul %9, %10, %cst_8 {dimension_numbers = #tpu.dot_dimension_numbers<[1], [0], [0], [1], [0, 0, 1, 1], [], []>} : vector<128x128xbf16>, vector<128x128xbf16>, vector<128x128xf32> -> vector<128x128xf32>
    %c0_9 = arith.constant 0 : index
    %c0_10 = arith.constant 0 : index
    %12 = vector.load %arg5[%c0_9, %c0_10] : memref<1x128xf32, #tpu.memory_space<vmem>>, vector<1x128xf32>
    %13 = vector.broadcast %12 : vector<1x128xf32> to vector<128x128xf32>
    %14 = arith.addf %11, %13 : vector<128x128xf32>
    %cst_11 = arith.constant 0.00999999977 : f32
    %15 = vector.broadcast %cst_11 : f32 to vector<128x128xf32>
    %16 = arith.mulf %15, %14 : vector<128x128xf32>
    %17 = arith.maximumf %14, %16 : vector<128x128xf32>
    %c0_12 = arith.constant 0 : index
    %c0_13 = arith.constant 0 : index
    %18 = vector.load %arg6[%c0_12, %c0_13] : memref<1x128xbf16, #tpu.memory_space<vmem>>, vector<1x128xbf16>
    %19 = arith.truncf %17 : vector<128x128xf32> to vector<128x128xbf16>
    %cst_14 = arith.constant dense<0.000000e+00> : vector<1x128xf32>
    %20 = tpu.matmul %18, %19, %cst_14 {dimension_numbers = #tpu.dot_dimension_numbers<[1], [1], [0], [0], [0, 0, 1, 0], [], []>} : vector<1x128xbf16>, vector<128x128xbf16>, vector<1x128xf32> -> vector<1x128xf32>
    %c0_15 = arith.constant 0 : index
    %21 = memref.load %arg7[%c0_15] : memref<1xf32, #tpu.memory_space<smem>>
    %22 = vector.broadcast %21 : f32 to vector<1x128xf32>
    %23 = arith.addf %20, %22 : vector<1x128xf32>
    %24 = vector.shape_cast %23 : vector<1x128xf32> to vector<1x1x128xf32>
    %c0_16 = arith.constant 0 : index
    %c0_17 = arith.constant 0 : index
    %c0_18 = arith.constant 0 : index
    %25 = vector.load %arg8[%c0_16, %c0_17, %c0_18] : memref<1x1x128xf32, #tpu.memory_space<vmem>>, vector<1x1x128xf32>
    tpu.vector_store %arg8[%c0_16, %c0_17, %c0_18], %24 {strides = array<i32>} : memref<1x1x128xf32, #tpu.memory_space<vmem>>, vector<1x1x128xf32>,
    return
  }
  func.func @transform_0(%arg0: i32) -> (i32, i32) {
    %c0_i32 = arith.constant 0 : i32
    %c0_i32_0 = arith.constant 0 : i32
    return %arg0, %c0_i32 : i32, i32
  }
  func.func @transform_1(%arg0: i32) -> (i32, i32) {
    %c0_i32 = arith.constant 0 : i32
    %c0_i32_0 = arith.constant 0 : i32
    %c0_i32_1 = arith.constant 0 : i32
    return %c0_i32, %c0_i32_0 : i32, i32
  }
  func.func @transform_2(%arg0: i32) -> (i32, i32) {
    %c0_i32 = arith.constant 0 : i32
    %c0_i32_0 = arith.constant 0 : i32
    %c0_i32_1 = arith.constant 0 : i32
    return %c0_i32, %c0_i32_0 : i32, i32
  }
  func.func @transform_3(%arg0: i32) -> (i32, i32) {
    %c0_i32 = arith.constant 0 : i32
    %c0_i32_0 = arith.constant 0 : i32
    %c0_i32_1 = arith.constant 0 : i32
    return %c0_i32, %c0_i32_0 : i32, i32
  }
  func.func @transform_4(%arg0: i32) -> (i32, i32) {
    %c0_i32 = arith.constant 0 : i32
    %c0_i32_0 = arith.constant 0 : i32
    %c0_i32_1 = arith.constant 0 : i32
    return %c0_i32, %c0_i32_0 : i32, i32
  }
  func.func @transform_5(%arg0: i32) -> (i32, i32) {
    %c0_i32 = arith.constant 0 : i32
    %c0_i32_0 = arith.constant 0 : i32
    %c0_i32_1 = arith.constant 0 : i32
    return %c0_i32, %c0_i32_0 : i32, i32
  }
  func.func @transform_6(%arg0: i32) -> i32 {
    %c0_i32 = arith.constant 0 : i32
    %c0_i32_0 = arith.constant 0 : i32
    return %c0_i32 : i32
  }
  func.func @transform_7(%arg0: i32) -> (i32, i32, i32) {
    %c0_i32 = arith.constant 0 : i32
    %c0_i32_0 = arith.constant 0 : i32
    %c0_i32_1 = arith.constant 0 : i32
    return %arg0, %c0_i32, %c0_i32_0 : i32, i32, i32
  }
}

</mosaic_0001>

<bundles_post_ra>
// kernel: tpu_custom_call.1
= control target key start
LH: loop header
LB: loop body
LE: loop exit
PB: predicated region body
PF: predicated region fallthrough
CT: control target
= control target key end

     0   :  { %vm97_vm0 = vcmask 130048   ;;  %s685_s0 = inlined_call_operand.vmem [shape: bf16[128,16], index: 0, kind: input, shape index: {}]   ;;  %s686_s1 = inlined_call_operand.vmem [shape: bf16[16,128], index: 1, kind: input, shape index: {}]   ;;  %s687_s2 = inlined_call_operand.vmem [shape: f32[1,128], index: 2, kind: input, shape index: {}]   ;;  %s688_s3 = inlined_call_operand.vmem [shape: bf16[128,128], index: 3, kind: input, shape index: {}]   ;;  %s689_s4 = inlined_call_operand.vmem [shape: f32[1,128], index: 4, kind: input, shape index: {}]   ;;  %s690_s5 = inlined_call_operand.vmem [shape: bf16[1,128], index: 5, kind: input, shape index: {}]   ;;  %s691_s6 = inlined_call_operand.<no memory space> [shape: f32[1], index: 6, kind: input, shape index: {}]   ;;  %s692_s7 = inlined_call_operand.hbm [shape: f32[1,1,128], index: 7, kind: output, shape index: {}]  }
   0x1   :  { %v485_v0 = vld [vmem:[%s686_s1] sm:$0xff] }
   0x2   :  { %v477_v1 = vld [vmem:[%s685_s0] sm:$0xff]  ;;  %129 = vmatpush.bf16.msra.mxu0 %v485_v0 }
   0x3   :  { %13 = vsyncpa [#allocation4], 0  ;;  %v478_v2 = vld [vmem:[%s685_s0 + $0x8] sm:$0xff]  ;;  %v479_v3 = vld [vmem:[%s685_s0 + $0x10] sm:$0xff]  ;;  %s531_s14 = smov [#allocation3]   ;;  %s392_s18 = sshll.u32 %s692_s7, 4  ;;  %s393_s18 = int_to_ptr.hbm [resolvable:$true] %s392_s18 }
   0x4   :  { %v480_v4 = vld [vmem:[%s685_s0 + $0x18] sm:$0xff]  ;;  %v481_v5 = vld [vmem:[%s685_s0 + $0x20] sm:$0xff]  ;;  %v482_v7 = vld [vmem:[%s685_s0 + $0x28] sm:$0xff]  ;;  %s390_s15 = sshll.u32 %s531_s14, 4  ;;  %s391_s15 = int_to_ptr.vmem [resolvable:$true] %s390_s15 }
   0x5   :  { %437 = vmatmul.msk.bf16.vlgmr.msra.gmra.mxu0 %vm97_vm0, %v477_v1  ;;  %v493_v6 = vld [vmem:[%s688_s3 + $0x38] sm:$0xff]  ;;  %v492_v8 = vld [vmem:[%s688_s3 + $0x30] sm:$0xff]  ;;  %v491_v9 = vld [vmem:[%s688_s3 + $0x28] sm:$0xff] }
   0x6   :  { %279 = vmatpush.bf16.msra.mxu1 %v493_v6  ;;  %494 = vmatpush.bf16.msra.mxu3 %v493_v6  ;;  %v490_v10 = vld [vmem:[%s688_s3 + $0x20] sm:$0xff]  ;;  %v483_v11 = vld [vmem:[%s685_s0 + $0x30] sm:$0xff]  ;;  %v489_v12 = vld [vmem:[%s688_s3 + $0x18] sm:$0xff] }
   0x7   :  { %v488_v13 = vld [vmem:[%s688_s3 + $0x10] sm:$0xff]  ;;  %v487_v14 = vld [vmem:[%s688_s3 + $0x8] sm:$0xff]  ;;  %v486_v15 = vld [vmem:[%s688_s3] sm:$0xff] }
   0x8   :  { %v484_v16 = vld [vmem:[%s685_s0 + $0x38] sm:$0xff]  ;;  %v634_v18 = vld [vmem:[%s687_s2] ss:$0 sm:$0xff] }
   0xa   :  { %280 = vmatpush.bf16.msra.mxu1 %v492_v8  ;;  %495 = vmatpush.bf16.msra.mxu3 %v492_v8 }
   0xe   :  { %281 = vmatpush.bf16.msra.mxu1 %v491_v9  ;;  %496 = vmatpush.bf16.msra.mxu3 %v491_v9 }
  0x12   :  { %282 = vmatpush.bf16.msra.mxu1 %v490_v10  ;;  %497 = vmatpush.bf16.msra.mxu3 %v490_v10 }
  0x15   :  { %438 = vmatmul.msk.bf16.gmra.mxu0 %vm97_vm0, %v478_v2 }
  0x16   :  { %283 = vmatpush.bf16.msra.mxu1 %v489_v12  ;;  %498 = vmatpush.bf16.msra.mxu3 %v489_v12 }
  0x1a   :  { %284 = vmatpush.bf16.msra.mxu1 %v488_v13  ;;  %499 = vmatpush.bf16.msra.mxu3 %v488_v13 }
  0x1e   :  { %285 = vmatpush.bf16.msra.mxu1 %v487_v14  ;;  %500 = vmatpush.bf16.msra.mxu3 %v487_v14 }
  0x22   :  { %286 = vmatpush.bf16.msra.mxu1 %v486_v15  ;;  %501 = vmatpush.bf16.msra.mxu3 %v486_v15 }
  0x25   :  { %439 = vmatmul.msk.bf16.gmra.mxu0 %vm97_vm0, %v479_v3 }
  0x35   :  { %440 = vmatmul.msk.bf16.gmra.mxu0 %vm97_vm0, %v480_v4 }
  0x45   :  { %441 = vmatmul.msk.bf16.gmra.mxu0 %vm97_vm0, %v481_v5 }
  0x55   :  { %442 = vmatmul.msk.bf16.gmra.mxu0 %vm97_vm0, %v482_v7 }
  0x65   :  { %443 = vmatmul.msk.bf16.gmra.mxu0 %vm97_vm0, %v483_v11 }
  0x75   :  { %444 = vmatmul.msk.bf16.gmra.mxu0 %vm97_vm0, %v484_v16 }
  0x82   :  { %v131_v17 = vpop.f32.mrf.mxu0 }
  0x83   :  { %v132_v19 = vadd.f32 %v634_v18, %v131_v17 }
  0x85   :  { %v171_v21 = vmul.f32 0.01, %v132_v19 }
  0x87   :  { %v187_v24 = vmax.f32 %v132_v19, %v171_v21 }
  0x8a   :  { %v133_v20 = vpop.f32.mrf.mxu0 }
  0x8b   :  { %v134_v22 = vadd.f32 %v634_v18, %v133_v20 }
  0x8d   :  { %v172_v23 = vmul.f32 0.01, %v134_v22 }
  0x8f   :  { %v188_v25 = vmax.f32 %v134_v22, %v172_v23 }
  0x91   :  { %v203_v26 = vpack.c.bf16 %v188_v25, %v187_v24 }
  0x92   :  { %v136_v27 = vpop.f32.mrf.mxu0 }
  0x93   :  { %287 = vmatmul.bf16.vlgmr.msra.gmra.mxu1 %v203_v26  ;;  %v137_v28 = vadd.f32 %v634_v18, %v136_v27 }
  0x95   :  { %v173_v30 = vmul.f32 0.01, %v137_v28 }
  0x97   :  { %v189_v33 = vmax.f32 %v137_v28, %v173_v30  ;;  %v655_v28 = vld [vmem:[%s689_s4] ss:$0 sm:$0xff] }
  0x9a   :  { %v138_v29 = vpop.f32.mrf.mxu0 }
  0x9b   :  { %v139_v31 = vadd.f32 %v634_v18, %v138_v29 }
  0x9d   :  { %v174_v32 = vmul.f32 0.01, %v139_v31 }
  0x9f   :  { %v190_v34 = vmax.f32 %v139_v31, %v174_v32 }
  0xa1   :  { %v204_v35 = vpack.c.bf16 %v190_v34, %v189_v33 }
  0xa2   :  { %v141_v36 = vpop.f32.mrf.mxu0 }
  0xa3   :  { %292 = vmatmul.bf16.gmra.mxu1 %v204_v35  ;;  %v142_v37 = vadd.f32 %v634_v18, %v141_v36 }
  0xa5   :  { %v175_v39 = vmul.f32 0.01, %v142_v37 }
  0xa7   :  { %v191_v42 = vmax.f32 %v142_v37, %v175_v39 }
  0xaa   :  { %v143_v38 = vpop.f32.mrf.mxu0 }
  0xab   :  { %v144_v40 = vadd.f32 %v634_v18, %v143_v38 }
  0xad   :  { %v176_v41 = vmul.f32 0.01, %v144_v40 }
  0xaf   :  { %v192_v43 = vmax.f32 %v144_v40, %v176_v41 }
  0xb1   :  { %v205_v44 = vpack.c.bf16 %v192_v43, %v191_v42 }
  0xb2   :  { %v146_v45 = vpop.f32.mrf.mxu0 }
  0xb3   :  { %297 = vmatmul.bf16.gmra.mxu1 %v205_v44  ;;  %v147_v46 = vadd.f32 %v634_v18, %v146_v45 }
  0xb5   :  { %v177_v48 = vmul.f32 0.01, %v147_v46 }
  0xb7   :  { %v193_v51 = vmax.f32 %v147_v46, %v177_v48 }
  0xba   :  { %v148_v47 = vpop.f32.mrf.mxu0 }
  0xbb   :  { %v149_v49 = vadd.f32 %v634_v18, %v148_v47 }
  0xbd   :  { %v178_v50 = vmul.f32 0.01, %v149_v49 }
  0xbf   :  { %v194_v52 = vmax.f32 %v149_v49, %v178_v50 }
  0xc1   :  { %v206_v53 = vpack.c.bf16 %v194_v52, %v193_v51 }
  0xc2   :  { %v151_v54 = vpop.f32.mrf.mxu0 }
  0xc3   :  { %302 = vmatmul.bf16.gmra.mxu1 %v206_v53  ;;  %v152_v55 = vadd.f32 %v634_v18, %v151_v54 }
  0xc5   :  { %v179_v57 = vmul.f32 0.01, %v152_v55 }
  0xc7   :  { %v195_v60 = vmax.f32 %v152_v55, %v179_v57 }
  0xca   :  { %v153_v56 = vpop.f32.mrf.mxu0 }
  0xcb   :  { %v154_v58 = vadd.f32 %v634_v18, %v153_v56 }
  0xcd   :  { %v180_v59 = vmul.f32 0.01, %v154_v58 }
  0xcf   :  { %v196_v61 = vmax.f32 %v154_v58, %v180_v59 }
  0xd1   :  { %v207_v62 = vpack.c.bf16 %v196_v61, %v195_v60 }
  0xd2   :  { %v156_v63 = vpop.f32.mrf.mxu0 }
  0xd3   :  { %307 = vmatmul.bf16.gmra.mxu1 %v207_v62  ;;  %v157_v0 = vadd.f32 %v634_v18, %v156_v63 }
  0xd5   :  { %v181_v2 = vmul.f32 0.01, %v157_v0 }
  0xd7   :  { %v197_v5 = vmax.f32 %v157_v0, %v181_v2 }
  0xda   :  { %v158_v1 = vpop.f32.mrf.mxu0 }
  0xdb   :  { %v159_v3 = vadd.f32 %v634_v18, %v158_v1 }
  0xdd   :  { %v182_v4 = vmul.f32 0.01, %v159_v3 }
  0xdf   :  { %v198_v6 = vmax.f32 %v159_v3, %v182_v4 }
  0xe1   :  { %v208_v7 = vpack.c.bf16 %v198_v6, %v197_v5 }
  0xe2   :  { %v161_v8 = vpop.f32.mrf.mxu0 }
  0xe3   :  { %312 = vmatmul.bf16.vlgmr.msra.gmra.mxu3 %v208_v7  ;;  %v162_v9 = vadd.f32 %v634_v18, %v161_v8 }
  0xe5   :  { %v183_v11 = vmul.f32 0.01, %v162_v9 }
  0xe7   :  { %v199_v14 = vmax.f32 %v162_v9, %v183_v11 }
  0xea   :  { %v163_v10 = vpop.f32.mrf.mxu0 }
  0xeb   :  { %v164_v12 = vadd.f32 %v634_v18, %v163_v10 }
  0xed   :  { %v184_v13 = vmul.f32 0.01, %v164_v12 }
  0xef   :  { %v200_v15 = vmax.f32 %v164_v12, %v184_v13 }
  0xf1   :  { %v209_v16 = vpack.c.bf16 %v200_v15, %v199_v14 }
  0xf2   :  { %v166_v17 = vpop.f32.mrf.mxu0 }
  0xf3   :  { %317 = vmatmul.bf16.gmra.mxu3 %v209_v16  ;;  %v167_v19 = vadd.f32 %v634_v18, %v166_v17 }
  0xf5   :  { %v185_v21 = vmul.f32 0.01, %v167_v19 }
  0xf7   :  { %v201_v24 = vmax.f32 %v167_v19, %v185_v21 }
  0xfa   :  { %v168_v20 = vpop.f32.mrf.mxu0 }
  0xfb   :  { %v169_v22 = vadd.f32 %v634_v18, %v168_v20 }
  0xfd   :  { %v186_v23 = vmul.f32 0.01, %v169_v22 }
  0xff   :  { %v202_v25 = vmax.f32 %v169_v22, %v186_v23 }
 0x101   :  { %v210_v26 = vpack.c.bf16 %v202_v25, %v201_v24 }
 0x103   :  { %322 = vmatmul.bf16.gmra.mxu3 %v210_v26 }
 0x110   :  { %v288_v27 = vpop.f32.mrf.mxu1 }
 0x111   :  { %v289_v29 = vadd.f32 %v655_v28, %v288_v27 }
 0x113   :  { %v328_v31 = vmul.f32 0.01, %v289_v29 }
 0x115   :  { %v344_v34 = vmax.f32 %v289_v29, %v328_v31 }
 0x118   :  { %v290_v30 = vpop.f32.mrf.mxu1 }
 0x119   :  { %v291_v32 = vadd.f32 %v655_v28, %v290_v30 }
 0x11b   :  { %v329_v33 = vmul.f32 0.01, %v291_v32 }
 0x11d   :  { %v345_v18 = vmax.f32 %v291_v32, %v329_v33 }
 0x11f   :  { %v659_v35 = vpack.c.bf16 %v345_v18, %v344_v34 }
 0x120   :  { %v293_v36 = vpop.f32.mrf.mxu1 }
 0x121   :  { %v294_v37 = vadd.f32 %v655_v28, %v293_v36 }
 0x123   :  { %v330_v39 = vmul.f32 0.01, %v294_v37 }
 0x125   :  { %v346_v42 = vmax.f32 %v294_v37, %v330_v39  ;;  %v360_v37 = vld [vmem:[%s690_s5] sm:$0x1] }
 0x128   :  { %v295_v38 = vpop.f32.mrf.mxu1 }
 0x129   :  { %v296_v40 = vadd.f32 %v655_v28, %v295_v38 }
 0x12b   :  { %v331_v41 = vmul.f32 0.01, %v296_v40 }
 0x12d   :  { %v347_v43 = vmax.f32 %v296_v40, %v331_v41 }
 0x12f   :  { %v362_v44 = vpack.c.bf16 %v347_v43, %v346_v42 }
 0x130   :  { %v298_v46 = vpop.f32.mrf.mxu1 }
 0x131   :  { %v299_v29 = vadd.f32 %v655_v28, %v298_v46 }
 0x133   :  { %v332_v33 = vmul.f32 0.01, %v299_v29 }
 0x135   :  { %v348_v18 = vmax.f32 %v299_v29, %v332_v33 }
 0x138   :  { %v300_v48 = vpop.f32.mrf.mxu1 }
 0x139   :  { %v301_v26 = vadd.f32 %v655_v28, %v300_v48 }
 0x13b   :  { %v333_v31 = vmul.f32 0.01, %v301_v26 }
 0x13d   :  { %v349_v34 = vmax.f32 %v301_v26, %v333_v31 }
 0x13f   :  { %v363_v36 = vpack.c.bf16 %v349_v34, %v348_v18 }
 0x140   :  { %v303_v51 = vpop.f32.mrf.mxu1 }
 0x141   :  { %v304_v21 = vadd.f32 %v655_v28, %v303_v51 }
 0x143   :  { %v334_v25 = vmul.f32 0.01, %v304_v21 }
 0x145   :  { %v350_v30 = vmax.f32 %v304_v21, %v334_v25 }
 0x148   :  { %v305_v53 = vpop.f32.mrf.mxu1 }
 0x149   :  { %v306_v19 = vadd.f32 %v655_v28, %v305_v53 }
 0x14b   :  { %v335_v23 = vmul.f32 0.01, %v306_v19 }
 0x14d   :  { %v351_v27 = vmax.f32 %v306_v19, %v335_v23 }
 0x14f   :  { %v364_v32 = vpack.c.bf16 %v351_v27, %v350_v30 }
 0x150   :  { %v308_v63 = vpop.f32.mrf.mxu1 }
 0x151   :  { %v309_v13 = vadd.f32 %v655_v28, %v308_v63 }
 0x153   :  { %v336_v17 = vmul.f32 0.01, %v309_v13 }
 0x155   :  { %v352_v22 = vmax.f32 %v309_v13, %v336_v17 }
 0x158   :  { %v310_v9 = vpop.f32.mrf.mxu1 }
 0x159   :  { %v311_v11 = vadd.f32 %v655_v28, %v310_v9 }
 0x15b   :  { %v337_v15 = vmul.f32 0.01, %v311_v11 }
 0x15d   :  { %v353_v20 = vmax.f32 %v311_v11, %v337_v15 }
 0x15f   :  { %v365_v24 = vpack.c.bf16 %v353_v20, %v352_v22 }
 0x166   :  { %v313_v45 = vpop.f32.mrf.mxu3 }
 0x167   :  { %v314_v5 = vadd.f32 %v655_v28, %v313_v45 }
 0x169   :  { %v338_v10 = vmul.f32 0.01, %v314_v5 }
 0x16b   :  { %v354_v14 = vmax.f32 %v314_v5, %v338_v10 }
 0x16e   :  { %v315_v47 = vpop.f32.mrf.mxu3 }
 0x16f   :  { %v316_v3 = vadd.f32 %v655_v28, %v315_v47 }
 0x171   :  { %v339_v7 = vmul.f32 0.01, %v316_v3 }
 0x173   :  { %v355_v12 = vmax.f32 %v316_v3, %v339_v7 }
 0x175   :  { %v366_v16 = vpack.c.bf16 %v355_v12, %v354_v14 }
 0x176   :  { %v318_v49 = vpop.f32.mrf.mxu3 }
 0x177   :  { %v319_v60 = vadd.f32 %v655_v28, %v318_v49 }
 0x179   :  { %v340_v2 = vmul.f32 0.01, %v319_v60 }
 0x17b   :  { %v356_v6 = vmax.f32 %v319_v60, %v340_v2 }
 0x17e   :  { %v320_v50 = vpop.f32.mrf.mxu3 }
 0x17f   :  { %v321_v58 = vadd.f32 %v655_v28, %v320_v50 }
 0x181   :  { %v341_v0 = vmul.f32 0.01, %v321_v58 }
 0x183   :  { %v357_v4 = vmax.f32 %v321_v58, %v341_v0 }
 0x185   :  { %v367_v8 = vpack.c.bf16 %v357_v4, %v356_v6 }
 0x186   :  { %v323_v52 = vpop.f32.mrf.mxu3 }
 0x187   :  { %v324_v54 = vadd.f32 %v655_v28, %v323_v52 }
 0x189   :  { %v342_v56 = vmul.f32 0.01, %v324_v54 }
 0x18b   :  { %v358_v61 = vmax.f32 %v324_v54, %v342_v56 }
 0x18e   :  { %v325_v55 = vpop.f32.mrf.mxu3 }
 0x18f   :  { %v326_v57 = vadd.f32 %v655_v28, %v325_v55  ;;  %v370_v28 = vstv %s691_s6 }
 0x191   :  { %v343_v59 = vmul.f32 0.01, %v326_v57 }
 0x193   :  { %v359_v62 = vmax.f32 %v326_v57, %v343_v59 }
 0x195   :  { %v368_v1 = vpack.c.bf16 %v359_v62, %v358_v61 }
 0x197   :  { %371 = vmatpush.bf16.xpose.msra.mxu2 %v368_v1 }
 0x19f   :  { %372 = vmatpush.bf16.xpose.msra.mxu2 %v367_v8 }
 0x1a7   :  { %373 = vmatpush.bf16.xpose.msra.mxu2 %v366_v16 }
 0x1af   :  { %374 = vmatpush.bf16.xpose.msra.mxu2 %v365_v24 }
 0x1b7   :  { %375 = vmatpush.bf16.xpose.msra.mxu2 %v364_v32 }
 0x1bf   :  { %376 = vmatpush.bf16.xpose.msra.mxu2 %v363_v36 }
 0x1c7   :  { %377 = vmatpush.bf16.xpose.msra.mxu2 %v362_v44 }
 0x1cf   :  { %378 = vmatpush.bf16.xpose.msra.mxu2 %v659_v35 }
 0x1d6   :  { %379 = vmatmul.bf16.vlgmr.msra.gmra.mxu2 %v360_v37 }
 0x259   :  { %v380_v38 = vpop.f32.mrf.mxu2 }
 0x25a   :  { %v381_v39 = vadd.f32 %v380_v38, %v370_v28 }
 0x25c   :  { %384 = vst [vmem:[#allocation3] sm:$0x1] %v381_v39 }
 0x25d   :  { %395 = dma.vmem_to_hbm [thread:$0]  %s391_s15, 16, %s393_s18, [#allocation4]  }
 0x261   :  { %v382_v35 = vpop.f32.mrf.mxu2 }
 0x262   :  { %529 = dma.done.wait [#allocation4], 16  }
 0x263   :  { %530 = vsyncadd [#allocation4], 4294967280 }
 0x264   :  { %400 = vsyncpa [#allocation4], 1 }

</bundles_post_ra>
